<compile_context>
chip_gen: v6e
topology: v6e:2x2x1
jax: 0.10.0
libtpu: 0.0.40
codegen_flags: <defaults>
</compile_context>

<pallas_src>
import jax
import jax.numpy as jnp
from jax.experimental import pallas as pl
from jax.experimental.pallas import tpu as pltpu

_LANE = 128
_MAX_TILE_HW = 2048  # see VMEM budget note above


def _round_up(x, m):
    return ((x + m - 1) // m) * m


def _conv1x1_bn_kernel(x_ref, w_ref, shift_ref, o_ref):
    # x_ref:     (Cin,  T)   f32 tile of one image's flattened (cropped) pixels
    # w_ref:     (Cout, Cin) bf16 conv weight with BN scale folded in
    # shift_ref: (Cout, 1)   f32 folded BN shift (bias)
    # o_ref:     (Cout, T)   f32 output tile
    x_bf16 = x_ref[...].astype(jnp.bfloat16)  # VPU cast; avoids an HBM pre-pass
    y = jnp.dot(w_ref[...], x_bf16, preferred_element_type=jnp.float32)
    o_ref[...] = (y + shift_ref[...]).astype(o_ref.dtype)


@jax.jit
def res_down_s_forward(x, conv_w, gamma, beta, running_mean, running_var,
                       eps=1e-5):
    """x: (N, Cin, H, W) float32.  conv_w: (Cout, Cin, 1, 1).  Returns NCHW f32."""
    N, Cin, H, W = x.shape
    Cout = conv_w.shape[0]

    # Crop first: a 1x1 conv + per-channel affine is pointwise in space, so the
    # crop commutes with the whole op (matches `if x.size(3) < 20`).  On this
    # path H, W < 20, so the cropped tensor (and this copy) is tiny.
    if W < 20:
        x = x[:, :, 4:-4, 4:-4]
    Hc, Wc = x.shape[2], x.shape[3]
    HW = Hc * Wc

    # Fold BN (inference, running stats) into the conv weight + per-channel bias.
    # The fold itself stays in f32.
    scale = (gamma / jnp.sqrt(running_var + eps)).astype(jnp.float32)
    shift = (beta - running_mean * scale).reshape(Cout, 1).astype(jnp.float32)
    w = (conv_w.reshape(Cout, Cin).astype(jnp.float32)
         * scale[:, None]).astype(jnp.bfloat16)
    # TODO(synk): keep `w` in f32 if strict f32 parity is required; the op is
    # HBM-bound so an f32 weight costs almost nothing.

    # NCHW -> (N, Cin, HW): pure reshape, no copy; x stays f32 (cast in-kernel).
    x_flat = x.reshape(N, Cin, HW)

    # --- lane-dense spatial tiling -------------------------------------------
    if HW < _LANE:
        # Tiny (cropped-template) path: pad the lane axis to one full vreg so
        # the single store per image is unmasked; pad is sliced off below.
        x_flat = jnp.pad(x_flat, ((0, 0), (0, 0), (0, _LANE - HW)))
        hw_padded = _LANE
    else:
        hw_padded = HW

    # Guarantee >= 2 grid steps even for a single image (v7x megacore sharding
    # and DMA/compute overlap on v5e/v6e).
    min_hw_tiles = 2 if (N == 1 and hw_padded > _LANE) else 1
    tile_hw = min(_MAX_TILE_HW,
                  _round_up(pl.cdiv(hw_padded, min_hw_tiles), _LANE))
    num_hw_tiles = pl.cdiv(hw_padded, tile_hw)

    cost = pl.CostEstimate(
        flops=2 * N * Cout * Cin * hw_padded,
        transcendentals=0,
        bytes_accessed=(N * Cin * hw_padded * 4        # x (f32)
                        + Cout * Cin * 2 + Cout * 4    # w (bf16) + shift (f32)
                        + N * Cout * hw_padded * 4))   # out (f32)

    out_flat = pl.pallas_call(
        _conv1x1_bn_kernel,
        out_shape=jax.ShapeDtypeStruct((N, Cout, hw_padded), jnp.float32),
        grid_spec=pltpu.PrefetchScalarGridSpec(
            num_scalar_prefetch=0,
            grid=(N, num_hw_tiles),
            in_specs=[
                pl.BlockSpec((None, Cin, tile_hw), lambda n, j: (n, 0, j)),
                # Grid-invariant operands: a single VMEM buffer is enough.
                pl.BlockSpec((Cout, Cin), lambda n, j: (0, 0),
                             pipeline_mode=pl.Buffered(1)),
                pl.BlockSpec((Cout, 1), lambda n, j: (0, 0),
                             pipeline_mode=pl.Buffered(1)),
            ],
            out_specs=pl.BlockSpec((None, Cout, tile_hw),
                                   lambda n, j: (n, 0, j)),
        ),
        compiler_params=pltpu.CompilerParams(
            dimension_semantics=("parallel", "parallel"),
            vmem_limit_bytes=48 * 1024 * 1024),
        cost_estimate=cost,
    )(x_flat, w, shift)

    if hw_padded != HW:
        out_flat = out_flat[:, :, :HW]
    return out_flat.reshape(N, Cout, Hc, Wc)


def _reference(x, conv_w, gamma, beta, running_mean, running_var, eps=1e-5):
    Cout, Cin, _, _ = conv_w.shape
    y = jnp.einsum("nchw,oc->nohw", x, conv_w.reshape(Cout, Cin))
    scale = gamma / jnp.sqrt(running_var + eps)
    shift = beta - running_mean * scale
    y = y * scale[None, :, None, None] + shift[None, :, None, None]
    if x.shape[3] < 20:
        y = y[:, :, 4:-4, 4:-4]
    return y


if __name__ == "__main__":
    # Small shapes consistent with the module: N=2, Cin=4, Cout=8, H=W=16.
    N, Cin, Cout, H, W = 2, 4, 8, 16, 16

    key = jax.random.PRNGKey(0)
    kx, kw, kg, kb, km, kv = jax.random.split(key, 6)

    x = jax.random.normal(kx, (N, Cin, H, W), dtype=jnp.float32)
    conv_w = jax.random.normal(kw, (Cout, Cin, 1, 1), dtype=jnp.float32) * 0.1
    gamma = jax.random.normal(kg, (Cout,), dtype=jnp.float32) * 0.1 + 1.0
    beta = jax.random.normal(kb, (Cout,), dtype=jnp.float32) * 0.1
    running_mean = jax.random.normal(km, (Cout,), dtype=jnp.float32) * 0.1
    running_var = jax.nn.softplus(
        jax.random.normal(kv, (Cout,), dtype=jnp.float32)) + 0.5

    out = res_down_s_forward(x, conv_w, gamma, beta, running_mean, running_var)
    out = jax.block_until_ready(out)

    ref = _reference(x, conv_w, gamma, beta, running_mean, running_var)
    assert out.shape == (N, Cout, H - 8, W - 8), out.shape
    # bf16 activations/weights on the MXU (f32 accumulate) -> loosened tolerance
    err = float(jnp.max(jnp.abs(out - ref)))
    assert jnp.allclose(out, ref, atol=2e-2, rtol=2e-2), f"mismatch: {err}"

    print("KERNEL_OK")
</pallas_src>

<mosaic_0001>
module attributes {stable_mosaic.version = 11 : i64} {
  func.func @_conv1x1_bn_kernel(%arg0: i32, %arg1: i32, %arg2: memref<1x4x128xf32, #tpu.memory_space<vmem>>, %arg3: memref<8x4xbf16, #tpu.memory_space<vmem>>, %arg4: memref<8x1xf32, #tpu.memory_space<vmem>>, %arg5: memref<1x8x128xf32, #tpu.memory_space<vmem>>) attributes {dimension_semantics = [#tpu.dimension_semantics<parallel>, #tpu.dimension_semantics<parallel>], iteration_bounds = array<i64: 2, 1>, scalar_prefetch = 0 : i64, scratch_operands = 0 : i64, tpu.core_type = #tpu.core_type<tc>, window_params = [{transform_indices = @transform_0, window_bounds = array<i64: 1, 4, 128>}, {pipeline_mode = #tpu.pipeline_mode<synchronous>, transform_indices = @transform_1, window_bounds = array<i64: 8, 4>}, {pipeline_mode = #tpu.pipeline_mode<synchronous>, transform_indices = @transform_2, window_bounds = array<i64: 8, 1>}, {transform_indices = @transform_3, window_bounds = array<i64: 1, 8, 128>}]} {
    %c0 = arith.constant 0 : index
    %c0_0 = arith.constant 0 : index
    %c0_1 = arith.constant 0 : index
    %0 = vector.load %arg2[%c0, %c0_0, %c0_1] : memref<1x4x128xf32, #tpu.memory_space<vmem>>, vector<1x4x128xf32>
    %1 = vector.shape_cast %0 : vector<1x4x128xf32> to vector<4x128xf32>
    %2 = arith.truncf %1 : vector<4x128xf32> to vector<4x128xbf16>
    %c0_2 = arith.constant 0 : index
    %c0_3 = arith.constant 0 : index
    %3 = vector.load %arg3[%c0_2, %c0_3] : memref<8x4xbf16, #tpu.memory_space<vmem>>, vector<8x4xbf16>
    %cst = arith.constant dense<0.000000e+00> : vector<8x128xf32>
    %4 = tpu.matmul %3, %2, %cst {dimension_numbers = #tpu.dot_dimension_numbers<[1], [0], [0], [1], [0, 0, 1, 1], [], []>} : vector<8x4xbf16>, vector<4x128xbf16>, vector<8x128xf32> -> vector<8x128xf32>
    %c0_4 = arith.constant 0 : index
    %c0_5 = arith.constant 0 : index
    %5 = vector.load %arg4[%c0_4, %c0_5] : memref<8x1xf32, #tpu.memory_space<vmem>>, vector<8x1xf32>
    %6 = vector.broadcast %5 : vector<8x1xf32> to vector<8x128xf32>
    %7 = arith.addf %4, %6 : vector<8x128xf32>
    %c0_6 = arith.constant 0 : index
    %c0_7 = arith.constant 0 : index
    %c0_8 = arith.constant 0 : index
    %8 = vector.load %arg5[%c0_6, %c0_7, %c0_8] : memref<1x8x128xf32, #tpu.memory_space<vmem>>, vector<1x8x128xf32>
    %9 = vector.shape_cast %8 : vector<1x8x128xf32> to vector<8x128xf32>
    %10 = vector.shape_cast %7 : vector<8x128xf32> to vector<1x8x128xf32>
    tpu.vector_store %arg5[%c0_6, %c0_7, %c0_8], %10 {strides = array<i32>} : memref<1x8x128xf32, #tpu.memory_space<vmem>>, vector<1x8x128xf32>,
    return
  }
  func.func @transform_0(%arg0: i32, %arg1: i32) -> (i32, i32, i32) {
    %c0_i32 = arith.constant 0 : i32
    %c0_i32_0 = arith.constant 0 : i32
    return %arg0, %c0_i32, %arg1 : i32, i32, i32
  }
  func.func @transform_1(%arg0: i32, %arg1: i32) -> (i32, i32) {
    %c0_i32 = arith.constant 0 : i32
    %c0_i32_0 = arith.constant 0 : i32
    %c0_i32_1 = arith.constant 0 : i32
    return %c0_i32, %c0_i32_0 : i32, i32
  }
  func.func @transform_2(%arg0: i32, %arg1: i32) -> (i32, i32) {
    %c0_i32 = arith.constant 0 : i32
    %c0_i32_0 = arith.constant 0 : i32
    %c0_i32_1 = arith.constant 0 : i32
    return %c0_i32, %c0_i32_0 : i32, i32
  }
  func.func @transform_3(%arg0: i32, %arg1: i32) -> (i32, i32, i32) {
    %c0_i32 = arith.constant 0 : i32
    %c0_i32_0 = arith.constant 0 : i32
    return %arg0, %c0_i32, %arg1 : i32, i32, i32
  }
}

</mosaic_0001>

<bundles_post_ra>
// kernel: res_down_s_forward.1
= control target key start
LH: loop header
LB: loop body
LE: loop exit
PB: predicated region body
PF: predicated region fallthrough
CT: control target
= control target key end

     0   :  { %s423_s12 = smov 0   ;;  %s425_s13 = smov 0   ;;  %s462_s0 = inlined_call_operand.vmem [shape: f32[2,4,128], index: 0, kind: input, shape index: {}]   ;;  %s463_s1 = inlined_call_operand.vmem [shape: bf16[8,4], index: 1, kind: input, shape index: {}]   ;;  %s464_s2 = inlined_call_operand.vmem [shape: f32[8,1], index: 2, kind: input, shape index: {}]   ;;  %s465_s3 = inlined_call_operand.vmem [shape: f32[2,8,128], index: 3, kind: output, shape index: {}]  }
   0x1   :  { %s427_s14 = smov 0  }
   0x2 LB: > { %s25_s15 = sadd.s32 1, %s394_s13  ;;  %p334_p0 = scmp.ge.s32.totalorder %s398_s14, 1  ;;  %s398_s14 = sphi %s427_s14, %s13_s14   ;;  %s394_s13 = sphi %s425_s13, %s467_s13   ;;  %s390_s12 = sphi %s423_s12, %s466_s12  }
   0x3   : > { %p27_p1 = scmp.ge.s32.totalorder %s25_s15, 2  ;;  %p155_p2 = scmp.lt.s32.totalorder %s398_s14, 3 }
   0x5   : > { %s469_s15 = smov (%p27_p1, %s25_s15), 0  ;;  %p156_p3 = pnand %p334_p0, %p155_p2 }
   0x6   : > { %p183_p4 = scmp.lt.s32.totalorder (!%p156_p3), %s390_s12, 1 }
   0x7   : > { %159 = sbr.rel (%p156_p3) target bundleno = 221 (0xdd), region = 32 }
   0xc   : > { %v400_v0 = vmov 0.0   ;;  %vm401_vm0 = vmmov 0   ;;  %v201_v1 = vld [vmem:[%s464_s2] sm:$0xff]  ;;  %s471_s12 = smov (!%p183_p4, %s390_s12), 1  ;;  %v402_v2 = vmov 0   ;;  %vm211_vm1 = vcmask 1041408  }
   0xd   : > { %342 = vmatprep.subr.bf16.mxu0 %v400_v0  ;;  %344 = vmatprep.mubr.msk.bf16.mxu0 %vm401_vm0, %v400_v0  ;;  %s335_s18 = sshll.u32 %s471_s12, 2  ;;  %v200_v6 = vld [vmem:[%s463_s1] sm:$0xf]  ;;  %vm207_vm2 = vcmask 31744   ;;  %s336_s24 = sshll.u32 %s471_s12, 3 }
   0xe   : > { %375 = vset.pattern.permute.xlu0 %v402_v2  ;;  %s189_s21 = scalar_lea.vmem %s462_s0, %s335_s18  ;;  %s196_s27 = scalar_lea.vmem %s465_s3, %s336_s24 }
   0xf   : > { %204 = vperm.xlu0 %375, %v201_v1   ;;  %v198_v3 = vld [vmem:[%s189_s21] sm:$0xf] }
  0x10   : > { %v199_v4 = vpack.c.bf16 %v198_v3, %v198_v3 }
  0x12   : > { %v213_v5 = vsel %vm211_vm1, %v199_v4, 0 }
  0x13   : > { %343 = vmatpush3.bf16.msra.mxu0 %v213_v5 }
  0x16   : > { %345 = vmatmul.mubr.msk.bf16.vlgmr.msra.gmra.mxu0 %vm207_vm2, %v200_v6 }
  0x8a   : > { %v205_v7 = vpop.permute.xlu0 %204 }
  0xd6   : > { %v249_v8 = vpop.f32.mrf.mxu0 }
  0xd7   : > { %v250_v9 = vadd.f32 %v249_v8, %v205_v7 }
  0xd8   : > { %v346_v10 = vpop.f32.mrf.mxu0 }
  0xd9   : > { %255 = vst [vmem:[%s196_s27] sm:$0xff] %v250_v9 }
  0xda   : > { %v252_v11 = vpop.f32.mrf.mxu0 }
  0xdc   : > { %v347_v12 = vpop.f32.mrf.mxu0 }
  0xdd PF: > { %s13_s14 = sadd.s32 1, %s398_s14   ;;  %s466_s12 = smov %s394_s13 }
  0xde   : > { %p10_p5 = scmp.ge.s32.totalorder %s13_s14, 4   ;;  %s467_s13 = smov %s469_s15 }
  0xe0   :  { %12 = sbr.rel (!%p10_p5) target bundleno = 2 (0x2), region = 62 }

</bundles_post_ra>
